<compile_context>
chip_gen: v7x
topology: tpu7x:2x2x1
jax: 0.10.0
libtpu: 0.0.40
codegen_flags: <defaults>
</compile_context>

<pallas_src>
import jax
import jax.numpy as jnp
from jax import lax
from jax.experimental import pallas as pl
from jax.experimental.pallas import tpu as pltpu

_EPS = 1e-5   # nn.LayerNorm default
_LANE = 128


def _make_kernel(inv_f):
    def _layernorm_kernel(x_ref, gamma_ref, beta_ref, o_ref):
        # x_ref: (R, F, tt).  Normalize over F (sublane axis, -2).
        x = x_ref[...].astype(jnp.float32)
        s = jnp.sum(x, axis=-2, keepdims=True)            # (R, 1, tt)
        s2 = jnp.sum(x * x, axis=-2, keepdims=True)       # (R, 1, tt)
        mean = s * inv_f
        # Single-pass biased variance (matches torch); clamp tiny negative
        # round-off so rsqrt never sees a negative argument (also covers
        # garbage in masked tail rows).
        var = jnp.maximum(s2 * inv_f - mean * mean, 0.0)
        inv = lax.rsqrt(var + _EPS)                       # (R, 1, tt)
        g = gamma_ref[...].astype(jnp.float32)            # (F, 1) broadcasts over rows/lanes
        b = beta_ref[...].astype(jnp.float32)
        scale = inv * g                                    # (R, F, tt)
        o_ref[...] = (x * scale + (b - mean * scale)).astype(o_ref.dtype)

    return _layernorm_kernel


def _choose_tiles(N, F, T, itemsize):
    """Pick (rows-per-block R, lane tile tt) from a VMEM byte budget."""
    target = 1 << 20           # ~1 MiB of f32 payload per block
    budget = 12 << 20          # stay under v5e's 16 MiB default scoped VMEM

    # Lane tile: full T when modest (a full-extent last dim satisfies the
    # (8,128) rule even when T % 128 != 0); otherwise a budget-derived multiple
    # of 128 capped at 2048 (512-2048 lanes already reach ~85% of HBM roofline).
    if T <= 2048:
        tt = T
    else:
        tt = min(2048, max(_LANE, ((target // (F * 4)) // _LANE) * _LANE))

    # Rows per block: batch several (B*C) rows to amortize per-step overhead.
    row_f32 = F * tt * 4
    R = int(min(N, max(1, target // max(row_f32, 1))))

    def est(r, t):
        native = r * F * t * itemsize
        f32 = r * F * t * 4
        # double-buffered in + out blocks, plus ~2 full-block f32 temporaries
        return 2 * 2 * native + 2 * f32

    while R > 1 and est(R, tt) > budget:
        R = max(1, R // 2)
    while est(R, tt) > budget and tt > _LANE:
        new_tt = max(_LANE, ((tt // 2) // _LANE) * _LANE)
        if new_tt == tt:
            break
        tt = new_tt

    # v7x has 2 TensorCores: avoid a degenerate 1-step grid when splittable.
    if pl.cdiv(N, R) * pl.cdiv(T, tt) < 2:
        if N >= 2:
            R = -(-N // 2)                                   # ceil(N / 2)
        elif T >= 2 * _LANE:
            tt = max(_LANE, ((-(-T // 2)) // _LANE) * _LANE)  # ~half, lane-aligned
    return R, tt


def cnn_layer_norm(x, gamma, beta, *, rows_per_block=None, t_tile=None):
    """x: (B, C, F, T); gamma/beta: (F,). LayerNorm over F; returns (B, C, F, T)."""
    B, C, F, T = x.shape
    N = B * C
    xr = x.reshape(N, F, T)            # free reshape, no transpose

    R, tt = _choose_tiles(N, F, T, jnp.dtype(x.dtype).itemsize)
    if rows_per_block is not None:
        R = rows_per_block
    if t_tile is not None:
        tt = t_tile

    gamma2d = gamma.reshape(F, 1)
    beta2d = beta.reshape(F, 1)

    grid = (pl.cdiv(N, R), pl.cdiv(T, tt))

    out = pl.pallas_call(
        _make_kernel(1.0 / F),
        out_shape=jax.ShapeDtypeStruct((N, F, T), x.dtype),
        grid_spec=pltpu.PrefetchScalarGridSpec(
            num_scalar_prefetch=0,
            grid=grid,
            in_specs=[
                pl.BlockSpec((R, F, tt), lambda i, j: (i, 0, j)),
                pl.BlockSpec((F, 1), lambda i, j: (0, 0)),   # gamma: non-advancing
                pl.BlockSpec((F, 1), lambda i, j: (0, 0)),   # beta:  non-advancing
            ],
            out_specs=pl.BlockSpec((R, F, tt), lambda i, j: (i, 0, j)),
        ),
        compiler_params=pltpu.CompilerParams(
            dimension_semantics=("parallel", "parallel")),
    )(xr, gamma2d, beta2d)

    return out.reshape(B, C, F, T)     # free reshape back


def _reference(x, gamma, beta):
    # Pure-JAX reference mirroring the PyTorch module (two-pass, f32).
    xt = jnp.transpose(x, (0, 1, 3, 2)).astype(jnp.float32)
    mean = jnp.mean(xt, axis=-1, keepdims=True)
    var = jnp.mean((xt - mean) ** 2, axis=-1, keepdims=True)
    y = (xt - mean) / jnp.sqrt(var + _EPS) * gamma + beta
    return jnp.transpose(y, (0, 1, 3, 2)).astype(x.dtype)


if __name__ == "__main__":
    key = jax.random.PRNGKey(0)
    kx, kg, kb = jax.random.split(key, 3)

    n_feats = 16
    gamma = 1.0 + 0.1 * jax.random.normal(kg, (n_feats,), dtype=jnp.float32)
    beta = 0.1 * jax.random.normal(kb, (n_feats,), dtype=jnp.float32)

    # 1) Small baseline shape (module-consistent): B=2, C=4, F=16, T=16.
    x = jax.random.normal(kx, (2, 4, n_feats, 16), dtype=jnp.float32)
    y = jax.block_until_ready(cnn_layer_norm(x, gamma, beta))
    assert y.shape == x.shape
    assert jnp.max(jnp.abs(y - _reference(x, gamma, beta))) < 1e-4

    # 2) Large, non-tile-aligned T: exercises the lane-tile cdiv/tail path and
    #    multi-row blocking (R=2, tt=2048, lane-dense output slabs).
    x2 = jax.random.normal(kx, (1, 2, n_feats, 8192 + 300), dtype=jnp.float32)
    y2 = jax.block_until_ready(cnn_layer_norm(x2, gamma, beta))
    assert jnp.max(jnp.abs(y2 - _reference(x2, gamma, beta))) < 1e-4

    # 3) Odd B*C (=3) with full-extent T: exercises the row-axis partial block
    #    (masked padded rows) and the >=2-grid-step split for v7x.
    x3 = jax.random.normal(kx, (1, 3, n_feats, 700), dtype=jnp.float32)
    y3 = jax.block_until_ready(cnn_layer_norm(x3, gamma, beta))
    assert jnp.max(jnp.abs(y3 - _reference(x3, gamma, beta))) < 1e-4

    print("KERNEL_OK")
</pallas_src>

<mosaic_0001>
module attributes {stable_mosaic.version = 11 : i64} {
  func.func @_layernorm_kernel(%arg0: i32, %arg1: i32, %arg2: memref<4x16x16xf32, #tpu.memory_space<vmem>>, %arg3: memref<16x1xf32, #tpu.memory_space<vmem>>, %arg4: memref<16x1xf32, #tpu.memory_space<vmem>>, %arg5: memref<4x16x16xf32, #tpu.memory_space<vmem>>) attributes {dimension_semantics = [#tpu.dimension_semantics<parallel>, #tpu.dimension_semantics<parallel>], iteration_bounds = array<i64: 2, 1>, scalar_prefetch = 0 : i64, scratch_operands = 0 : i64, tpu.core_type = #tpu.core_type<tc>, window_params = [{transform_indices = @transform_0, window_bounds = array<i64: 4, 16, 16>}, {pipeline_mode = #tpu.pipeline_mode<synchronous>, transform_indices = @transform_1, window_bounds = array<i64: 16, 1>}, {pipeline_mode = #tpu.pipeline_mode<synchronous>, transform_indices = @transform_2, window_bounds = array<i64: 16, 1>}, {transform_indices = @transform_3, window_bounds = array<i64: 4, 16, 16>}]} {
    %c0 = arith.constant 0 : index
    %c0_0 = arith.constant 0 : index
    %c0_1 = arith.constant 0 : index
    %0 = vector.load %arg2[%c0, %c0_0, %c0_1] : memref<4x16x16xf32, #tpu.memory_space<vmem>>, vector<4x16x16xf32>
    %cst = arith.constant dense<0.000000e+00> : vector<4x16xf32>
    %1 = vector.multi_reduction <add>, %0, %cst [1] : vector<4x16x16xf32> to vector<4x16xf32>
    %2 = vector.shape_cast %1 : vector<4x16xf32> to vector<4x1x16xf32>
    %3 = arith.mulf %0, %0 : vector<4x16x16xf32>
    %cst_2 = arith.constant dense<0.000000e+00> : vector<4x16xf32>
    %4 = vector.multi_reduction <add>, %3, %cst_2 [1] : vector<4x16x16xf32> to vector<4x16xf32>
    %5 = vector.shape_cast %4 : vector<4x16xf32> to vector<4x1x16xf32>
    %cst_3 = arith.constant 6.250000e-02 : f32
    %6 = vector.broadcast %cst_3 : f32 to vector<4x1x16xf32>
    %7 = arith.mulf %2, %6 : vector<4x1x16xf32>
    %cst_4 = arith.constant 6.250000e-02 : f32
    %8 = vector.broadcast %cst_4 : f32 to vector<4x1x16xf32>
    %9 = arith.mulf %5, %8 : vector<4x1x16xf32>
    %10 = arith.mulf %7, %7 : vector<4x1x16xf32>
    %11 = arith.subf %9, %10 : vector<4x1x16xf32>
    %cst_5 = arith.constant 0.000000e+00 : f32
    %12 = vector.broadcast %cst_5 : f32 to vector<4x1x16xf32>
    %13 = arith.maximumf %11, %12 : vector<4x1x16xf32>
    %cst_6 = arith.constant 9.99999974E-6 : f32
    %14 = vector.broadcast %cst_6 : f32 to vector<4x1x16xf32>
    %15 = arith.addf %13, %14 : vector<4x1x16xf32>
    %16 = math.rsqrt %15 : vector<4x1x16xf32>
    %c0_7 = arith.constant 0 : index
    %c0_8 = arith.constant 0 : index
    %17 = vector.load %arg3[%c0_7, %c0_8] : memref<16x1xf32, #tpu.memory_space<vmem>>, vector<16x1xf32>
    %c0_9 = arith.constant 0 : index
    %c0_10 = arith.constant 0 : index
    %18 = vector.load %arg4[%c0_9, %c0_10] : memref<16x1xf32, #tpu.memory_space<vmem>>, vector<16x1xf32>
    %19 = vector.shape_cast %17 : vector<16x1xf32> to vector<1x16x1xf32>
    %20 = vector.broadcast %16 : vector<4x1x16xf32> to vector<4x16x16xf32>
    %21 = vector.broadcast %19 : vector<1x16x1xf32> to vector<4x16x16xf32>
    %22 = arith.mulf %20, %21 : vector<4x16x16xf32>
    %23 = arith.mulf %0, %22 : vector<4x16x16xf32>
    %24 = vector.broadcast %7 : vector<4x1x16xf32> to vector<4x16x16xf32>
    %25 = arith.mulf %24, %22 : vector<4x16x16xf32>
    %26 = vector.shape_cast %18 : vector<16x1xf32> to vector<1x16x1xf32>
    %27 = vector.broadcast %26 : vector<1x16x1xf32> to vector<4x16x16xf32>
    %28 = arith.subf %27, %25 : vector<4x16x16xf32>
    %29 = arith.addf %23, %28 : vector<4x16x16xf32>
    %c0_11 = arith.constant 0 : index
    %c0_12 = arith.constant 0 : index
    %c0_13 = arith.constant 0 : index
    %30 = vector.load %arg5[%c0_11, %c0_12, %c0_13] : memref<4x16x16xf32, #tpu.memory_space<vmem>>, vector<4x16x16xf32>
    tpu.vector_store %arg5[%c0_11, %c0_12, %c0_13], %29 {strides = array<i32>} : memref<4x16x16xf32, #tpu.memory_space<vmem>>, vector<4x16x16xf32>,
    return
  }
  func.func @transform_0(%arg0: i32, %arg1: i32) -> (i32, i32, i32) {
    %c0_i32 = arith.constant 0 : i32
    %c0_i32_0 = arith.constant 0 : i32
    return %arg0, %c0_i32, %arg1 : i32, i32, i32
  }
  func.func @transform_1(%arg0: i32, %arg1: i32) -> (i32, i32) {
    %c0_i32 = arith.constant 0 : i32
    %c0_i32_0 = arith.constant 0 : i32
    %c0_i32_1 = arith.constant 0 : i32
    return %c0_i32, %c0_i32_0 : i32, i32
  }
  func.func @transform_2(%arg0: i32, %arg1: i32) -> (i32, i32) {
    %c0_i32 = arith.constant 0 : i32
    %c0_i32_0 = arith.constant 0 : i32
    %c0_i32_1 = arith.constant 0 : i32
    return %c0_i32, %c0_i32_0 : i32, i32
  }
  func.func @transform_3(%arg0: i32, %arg1: i32) -> (i32, i32, i32) {
    %c0_i32 = arith.constant 0 : i32
    %c0_i32_0 = arith.constant 0 : i32
    return %arg0, %c0_i32, %arg1 : i32, i32, i32
  }
}

</mosaic_0001>

<bundles_post_ra>
// kernel: tpu_custom_call.1
= control target key start
LH: loop header
LB: loop body
LE: loop exit
PB: predicated region body
PF: predicated region fallthrough
CT: control target
= control target key end

     0   :  { %8 = vsyncpa [#allocation3], 0  ;;  %s1001_s0 = inlined_call_operand.hbm [shape: f32[8,16,16], index: 0, kind: input, shape index: {}]   ;;  %s1002_s1 = inlined_call_operand.vmem [shape: f32[16,1], index: 1, kind: input, shape index: {}]   ;;  %s1003_s2 = inlined_call_operand.vmem [shape: f32[16,1], index: 2, kind: input, shape index: {}]   ;;  %s1004_s3 = inlined_call_operand.hbm [shape: f32[8,16,16], index: 3, kind: output, shape index: {}]  }
   0x1   :  { %10 = vsyncpa [#allocation3 + $0x1], 0 }
   0x2   :  { %11 = vsyncpa [#allocation4], 0 }
   0x3   :  { %13 = vsyncpa [#allocation4 + $0x1], 0  ;;  %s738_s12 = smov 0   ;;  %s740_s13 = smov 0  }
   0x4   :  { %s742_s14 = smov 0   ;;  %s744_s15 = smov 0  }
   0x5   :  { %s746_s16 = smov 0   ;;  %s748_s17 = smov 0  }
   0x6 LB: > { %s499_s18 = sadd.s32 4294967295, %s709_s17   ;;  %s500_s19 = sadd.s32 4294967294, %s709_s17   ;;  %s709_s17 = sphi %s748_s17, %s19_s17   ;;  %s705_s16 = sphi %s746_s16, %s1019_s16   ;;  %s701_s15 = sphi %s744_s15, %s1018_s15   ;;  %s697_s14 = sphi %s742_s14, %s1017_s14   ;;  %s693_s13 = sphi %s740_s13, %s1016_s13   ;;  %s689_s12 = sphi %s738_s12, %s1015_s12  }
   0x7   : > { %s31_s20 = sadd.s32 1, %s705_s16  ;;  %s40_s21 = sadd.s32 1, %s697_s14 }
   0x8   : > { %p33_p0 = scmp.ge.s32.totalorder %s31_s20, 2  ;;  %p47_p1 = scmp.ne.s32.totalorder %s697_s14, %s693_s13 }
   0x9   : > { %p48_p2 = scmp.eq.s32.totalorder %s709_s17, 0  ;;  %p53_p3 = scmp.ne.s32.totalorder %s693_s13, %s689_s12 }
   0xa   : > { %s1021_s20 = smov (%p33_p0, %s31_s20), 0  ;;  %p54_p5 = scmp.eq.s32.totalorder %s499_s18, 0 }
   0xb   : > { %p779_p4 = por %p48_p2, %p47_p1  ;;  %s35_s23 = ssub.s32 %s705_s16, %s1021_s20 }
   0xc   : > { %p121_p6 = scmp.eq.s32.totalorder %s499_s18, 1  ;;  %p38_p7 = scmp.eq.s32.totalorder %s35_s23, 0 }
   0xd   : > { %p785_p8 = por %p54_p5, %p53_p3  ;;  %p127_p10 = scmp.eq.s32.totalorder %s500_s19, 1 }
   0xe   : > { %p789_p9 = por %p121_p6, %p47_p1  ;;  %p532_p13 = scmp.lt.s32.totalorder %s709_s17, 2 }
   0xf   : > { %s794_s26 = scalar_select %p38_p7, %s697_s14, %s40_s21  }
  0x10   : > { %s1008_s25 = scalar_select %p789_p9, 1, 0 }
  0x11   : > { %p796_p11 = por %p127_p10, %p53_p3  ;;  %s153_s28 = sand.u32 1, %s697_s14  }
  0x12   : > { %s503_s29 = sshll.u32 %s153_s28, 6  ;;  %s517_s30 = sshll.u32 %s705_s16, 10 }
  0x13   : > { %s1009_s27 = scalar_select %p796_p11, 1, 0 }
  0x14   : > { %s807_s6 = scalar_lea.hbm %s1001_s0, %s517_s30  ;;  %s157_s7 = scalar_lea.vmem [#allocation2], %s503_s29 }
  0x15   : > { %s166_s8 = sshll.u32 %s157_s7, 4  ;;  %p813_p0 = pnand %p532_p13, %p779_p4  ;;  %s809_s8 = int_to_ptr.vmem [resolvable:$true] %s166_s8 }
  0x16   : > { %s818_s10 = scalar_lea.sflag [#allocation3], %s153_s28  ;;  %s597_s11 = scalar_lea.hbm %s807_s6, 1024 }
  0x17   : > { %p598_p2 = scmp.ne.s32.totalorder %s807_s6, %s597_s11  ;;  %p599_p3 = pneg %p813_p0 }
  0x18   : > { %s602_s21 = scalar_lea.hbm %s1001_s0, 2048  ;;  %p603_p4 = scmp.lt.u32.totalorder %s807_s6, %s1001_s0 }
  0x19   : > { %p600_p5 = pnand %p599_p3, %p598_p2  ;;  %p604_p7 = scmp.lt.u32.totalorder %s602_s21, %s597_s11 }
  0x1a   : > { %p606_p13 = scmp.lt.u32.totalorder %s597_s11, %s807_s6 }
  0x1b   : > { %p601_p6 = pneg %p600_p5  ;;  %p605_p10 = por %p604_p7, %p603_p4 }
  0x1d   : > { %p607_p12 = por %p606_p13, %p605_p10 }
  0x1f   : > { %p608_p1 = pnand %p607_p12, %p601_p6 }
  0x21   : > { %611 = shalt.err (!%p608_p1)
}
  0x22   : > { %s612_s28 = scalar_lea.vmem %s809_s8, 1024  ;;  %s711_s29 = smov [#allocation2]  }
  0x23   : > { %p613_p2 = scmp.ne.s32.totalorder %s809_s8, %s612_s28  ;;  %s617_s30 = sshll.u32 %s711_s29, 4  ;;  %s618_s30 = int_to_ptr.vmem [resolvable:$false] %s617_s30 }
  0x24   : > { %s619_s4 = scalar_lea.vmem %s618_s30, 2048  ;;  %p620_p9 = scmp.lt.s32.totalorder %s809_s8, %s618_s30 }
  0x25   : > { %p615_p5 = pnand %p613_p2, %p599_p3  ;;  %p621_p4 = scmp.lt.s32.totalorder %s619_s4, %s612_s28 }
  0x27   : > { %p616_p11 = pneg %p615_p5  ;;  %p622_p7 = por %p621_p4, %p620_p9 }
  0x29   : > { %p623_p10 = pnand %p622_p7, %p616_p11 }
  0x2b   : > { %626 = shalt.err (!%p623_p10)
}
  0x2c   : > { %s712_s5 = smov 128   ;;  %s713_s7 = smov 8  }
  0x2d   : > { %527 = dma.hbm_to_vmem [thread:$0]  (!%p813_p0), %s807_s6, 1024, %s809_s8, %s818_s10, %s712_s5, %s712_s5, %s713_s7  }
  0x2e   : > { %p174_p12 = scmp.lt.s32.totalorder %s709_s17, 3  ;;  %p1011_p1 = scmp.ge.s32.totalorder %s709_s17, 1 }
  0x30   : > { %p175_p3 = pnand %p1011_p1, %p174_p12 }
  0x31   : > { %s850_s11 = sand.u32 (!%p175_p3), 1, %s693_s13  }
  0x32   : > { %178 = sbr.rel (%p175_p3) target bundleno = 217 (0xd9), region = 32  ;;  %s508_s18 = sshll.u32 (!%p175_p3), %s850_s11, 6 }
  0x33   : > { %s181_s19 = scalar_lea.sflag (!%p175_p3), [#allocation3], %s850_s11  ;;  %s184_s21 = scalar_lea.vmem (!%p175_p3), [#allocation2], %s508_s18 }
  0x39   : > { %680 = dma.done.wait (%p785_p8), %s181_s19, 1024  }
  0x3a   : > { %682 = vsyncadd (%p785_p8), %s181_s19, 4294966272  ;;  %v714_v0 = vmov 0   ;;  %v328_v1 = vld [vmem:[%s1003_s2] sm:$0xff]  ;;  %v329_v3 = vld [vmem:[%s1003_s2 + $0x8] sm:$0xff]  ;;  %vm217_vm0 = vcmask 130048   ;;  %s519_s29 = sshll.u32 %s701_s15, 10 }
  0x3b   : > { %588 = vset.pattern.permute.xlu1 %v714_v0  ;;  %587 = vset.pattern.permute.xlu0 %v714_v0  ;;  %v326_v2 = vld [vmem:[%s1002_s1] sm:$0xff]  ;;  %v327_v4 = vld [vmem:[%s1002_s1 + $0x8] sm:$0xff]  ;;  %v880_v9 = vld [vmem:[%s184_s21 + $0x10] sm:$0xff]  ;;  %s206_s30 = scalar_lea.vmem [#allocation5], %s508_s18  ;;  %s946_s7 = scalar_lea.hbm %s1004_s3, %s519_s29 }
  0x3c   : > { %366 = vperm.xlu1 %588, %v328_v1   ;;  %332 = vperm.xlu0 %587, %v326_v2   ;;  %v872_v5 = vld [vmem:[%s184_s21] sm:$0xff]  ;;  %v874_v6 = vld [vmem:[%s184_s21 + $0x8] sm:$0xff]  ;;  %v882_v10 = vld [vmem:[%s184_s21 + $0x18] sm:$0xff]  ;;  %v227_v18 = vsel %vm217_vm0, %v880_v9, 0.0  ;;  %v256_v20 = vmul.f32 %v880_v9, %v880_v9  ;;  %s414_s4 = sshll.u32 %s206_s30, 4  ;;  %s399_s18 = scalar_lea.sflag [#allocation4], %s850_s11  ;;  %s948_s4 = int_to_ptr.vmem [resolvable:$true] %s414_s4 }
  0x3d   : > { %v218_v7 = vsel %vm217_vm0, %v872_v5, 0.0  ;;  %v219_v8 = vsel %vm217_vm0, %v874_v6, 0.0  ;;  %v884_v11 = vld [vmem:[%s184_s21 + $0x20] sm:$0xff]  ;;  %v886_v12 = vld [vmem:[%s184_s21 + $0x28] sm:$0xff]  ;;  %v888_v13 = vld [vmem:[%s184_s21 + $0x30] sm:$0xff]  ;;  %v254_v16 = vmul.f32 %v872_v5, %v872_v5  ;;  %v255_v17 = vmul.f32 %v874_v6, %v874_v6  ;;  %s627_s19 = scalar_lea.vmem %s948_s4, 1024 }
  0x3e   : > { %v890_v14 = vld [vmem:[%s184_s21 + $0x38] sm:$0xff]  ;;  %v220_v15 = vadd.f32 %v219_v8, %v218_v7  ;;  %v228_v19 = vsel %vm217_vm0, %v882_v10, 0.0  ;;  %v257_v21 = vmul.f32 %v882_v10, %v882_v10  ;;  %v236_v22 = vsel %vm217_vm0, %v884_v11, 0.0  ;;  %p628_p8 = scmp.ne.s32.totalorder %s948_s4, %s627_s19  ;;  %p1012_p9 = scmp.ne.s32.totalorder %s1008_s25, 0 }
  0x3f   : > { %v237_v23 = vsel %vm217_vm0, %v886_v12, 0.0  ;;  %v258_v24 = vmul.f32 %v884_v11, %v884_v11  ;;  %v259_v25 = vmul.f32 %v886_v12, %v886_v12  ;;  %v245_v26 = vsel %vm217_vm0, %v888_v13, 0.0  ;;  %s715_s21 = smov [#allocation5]  }
  0x40   : > { %371 = vperm.xlu1 %588, %v329_v3   ;;  %337 = vperm.xlu0 %587, %v327_v4   ;;  %v246_v27 = vsel %vm217_vm0, %v890_v14, 0.0  ;;  %v260_v28 = vmul.f32 %v888_v13, %v888_v13  ;;  %v261_v29 = vmul.f32 %v890_v14, %v890_v14  ;;  %v229_v30 = vadd.f32 %v228_v19, %v227_v18  ;;  %p629_p11 = pnand %p628_p8, %p1012_p9  ;;  %s631_s6 = sshll.u32 %s715_s21, 4  ;;  %s632_s6 = int_to_ptr.vmem [resolvable:$false] %s631_s6 }
  0x41   : > { %v262_v31 = vsel %vm217_vm0, %v254_v16, 0.0  ;;  %v263_v32 = vsel %vm217_vm0, %v255_v17, 0.0  ;;  %v238_v33 = vadd.f32 %v237_v23, %v236_v22  ;;  %v271_v34 = vsel %vm217_vm0, %v256_v20, 0.0  ;;  %s633_s8 = scalar_lea.vmem %s632_s6, 2048  ;;  %p634_p6 = scmp.lt.s32.totalorder %s948_s4, %s632_s6 }
  0x42   : > { %v272_v35 = vsel %vm217_vm0, %v257_v21, 0.0  ;;  %v247_v36 = vadd.f32 %v246_v27, %v245_v26  ;;  %v280_v37 = vsel %vm217_vm0, %v258_v24, 0.0  ;;  %v281_v38 = vsel %vm217_vm0, %v259_v25, 0.0  ;;  %p630_p0 = pneg %p629_p11  ;;  %p635_p13 = scmp.lt.s32.totalorder %s633_s8, %s627_s19 }
  0x43   : > { %v221_v39 = vrot.slane %v220_v15, 4  ;;  %v264_v40 = vadd.f32 %v263_v32, %v262_v31  ;;  %v289_v41 = vsel %vm217_vm0, %v260_v28, 0.0  ;;  %v290_v42 = vsel %vm217_vm0, %v261_v29, 0.0 }
  0x44   : > { %v230_v43 = vrot.slane %v229_v30, 4  ;;  %v273_v44 = vadd.f32 %v272_v35, %v271_v34  ;;  %v239_v45 = vrot.slane %v238_v33, 4  ;;  %v282_v46 = vadd.f32 %v281_v38, %v280_v37  ;;  %p636_p2 = por %p635_p13, %p634_p6 }
  0x45   : > { %v248_v47 = vrot.slane %v247_v36, 4  ;;  %v291_v48 = vadd.f32 %v290_v42, %v289_v41  ;;  %v222_v49 = vadd.f32 %v221_v39, %v220_v15  ;;  %v265_v50 = vrot.slane %v264_v40, 4 }
  0x46   : > { %v231_v51 = vadd.f32 %v230_v43, %v229_v30  ;;  %v274_v52 = vrot.slane %v273_v44, 4  ;;  %v240_v53 = vadd.f32 %v239_v45, %v238_v33  ;;  %v283_v54 = vrot.slane %v282_v46, 4  ;;  %p637_p5 = pnand %p636_p2, %p630_p0 }
  0x47   : > { %v249_v55 = vadd.f32 %v248_v47, %v247_v36  ;;  %v292_v56 = vrot.slane %v291_v48, 4  ;;  %v223_v57 = vrot.slane %v222_v49, 2  ;;  %v266_v58 = vadd.f32 %v265_v50, %v264_v40 }
  0x48   : > { %v232_v59 = vrot.slane %v231_v51, 2  ;;  %v275_v60 = vadd.f32 %v274_v52, %v273_v44  ;;  %v241_v61 = vrot.slane %v240_v53, 2  ;;  %v284_v62 = vadd.f32 %v283_v54, %v282_v46 }
  0x49   : > { %v250_v63 = vrot.slane %v249_v55, 2  ;;  %v293_v0 = vadd.f32 %v292_v56, %v291_v48  ;;  %v224_v1 = vadd.f32 %v223_v57, %v222_v49  ;;  %v267_v2 = vrot.slane %v266_v58, 2 }
  0x4a   : > { %v233_v3 = vadd.f32 %v232_v59, %v231_v51  ;;  %v276_v4 = vrot.slane %v275_v60, 2  ;;  %v242_v7 = vadd.f32 %v241_v61, %v240_v53  ;;  %v285_v8 = vrot.slane %v284_v62, 2 }
  0x4b   : > { %v251_v15 = vadd.f32 %v250_v63, %v249_v55  ;;  %v294_v16 = vrot.slane %v293_v0, 2  ;;  %v225_v17 = vrot.slane %v224_v1, 1  ;;  %v268_v18 = vadd.f32 %v267_v2, %v266_v58 }
  0x4c   : > { %v234_v19 = vrot.slane %v233_v3, 1  ;;  %v277_v20 = vadd.f32 %v276_v4, %v275_v60  ;;  %v243_v21 = vrot.slane %v242_v7, 1  ;;  %v286_v22 = vadd.f32 %v285_v8, %v284_v62 }
  0x4d   : > { %v252_v23 = vrot.slane %v251_v15, 1  ;;  %v295_v24 = vadd.f32 %v294_v16, %v293_v0  ;;  %v226_v25 = vadd.f32 %v225_v17, %v224_v1  ;;  %v269_v26 = vrot.slane %v268_v18, 1 }
  0x4e   : > { %v235_v27 = vadd.f32 %v234_v19, %v233_v3  ;;  %v278_v28 = vrot.slane %v277_v20, 1  ;;  %v244_v29 = vadd.f32 %v243_v21, %v242_v7  ;;  %v287_v30 = vrot.slane %v286_v22, 1 }
  0x4f   : > { %v253_v31 = vadd.f32 %v252_v23, %v251_v15  ;;  %v296_v32 = vrot.slane %v295_v24, 1  ;;  %v270_v33 = vadd.f32 %v269_v26, %v268_v18  ;;  %v298_v34 = vmul.f32 0.0625, %v226_v25 }
  0x50   : > { %v279_v35 = vadd.f32 %v278_v28, %v277_v20  ;;  %v299_v36 = vmul.f32 0.0625, %v235_v27  ;;  %v288_v37 = vadd.f32 %v287_v30, %v286_v22  ;;  %v300_v38 = vmul.f32 0.0625, %v244_v29 }
  0x51   : > { %v297_v39 = vadd.f32 %v296_v32, %v295_v24  ;;  %v301_v40 = vmul.f32 0.0625, %v253_v31  ;;  %v302_v41 = vmul.f32 0.0625, %v270_v33  ;;  %v306_v42 = vmul.f32 %v298_v34, %v298_v34 }
  0x52   : > { %v303_v43 = vmul.f32 0.0625, %v279_v35  ;;  %v307_v44 = vmul.f32 %v299_v36, %v299_v36  ;;  %v304_v45 = vmul.f32 0.0625, %v288_v37  ;;  %v308_v46 = vmul.f32 %v300_v38, %v300_v38 }
  0x53   : > { %v305_v47 = vmul.f32 0.0625, %v297_v39  ;;  %v309_v48 = vmul.f32 %v301_v40, %v301_v40  ;;  %v310_v49 = vsub.f32 %v302_v41, %v306_v42 }
  0x54   : > { %v311_v50 = vsub.f32 %v303_v43, %v307_v44  ;;  %v312_v51 = vsub.f32 %v304_v45, %v308_v46 }
  0x55   : > { %v313_v52 = vsub.f32 %v305_v47, %v309_v48  ;;  %v314_v53 = vmax.f32 %v310_v49, 0.0 }
  0x56   : > { %v315_v54 = vmax.f32 %v311_v50, 0.0  ;;  %v316_v55 = vmax.f32 %v312_v51, 0.0 }
  0x57   : > { %v317_v56 = vmax.f32 %v313_v52, 0.0  ;;  %v318_v57 = vadd.f32 1e-05, %v314_v53 }
  0x58   : > { %v319_v58 = vadd.f32 1e-05, %v315_v54  ;;  %v320_v59 = vadd.f32 1e-05, %v316_v55 }
  0x59   : > { %v321_v60 = vadd.f32 1e-05, %v317_v56  ;;  %589 = vrsqrt.f32 %v318_v57 }
  0x5a   : > { %591 = vrsqrt.f32 %v319_v58 }
  0x5b   : > { %593 = vrsqrt.f32 %v320_v59 }
  0x5c   : > { %595 = vrsqrt.f32 %v321_v60 }
  0x63   : > { %v590_v61 = vpop.eup %589 }
  0x64   : > { %v592_v62 = vpop.eup %591 }
  0x65   : > { %v594_v63 = vpop.eup %593 }
  0x66   : > { %v596_v0 = vpop.eup %595 }
  0xbb   : > { %v333_v1 = vpop.permute.xlu0 %332  ;;  %v367_v18 = vpop.permute.xlu1 %366 }
  0xbc   : > { %v340_v2 = vmul.f32 %v590_v61, %v333_v1  ;;  %v342_v3 = vmul.f32 %v592_v62, %v333_v1  ;;  %v344_v4 = vmul.f32 %v594_v63, %v333_v1  ;;  %v346_v7 = vmul.f32 %v596_v0, %v333_v1 }
  0xbe   : > { %v348_v8 = vmul.f32 %v340_v2, %v872_v5  ;;  %v350_v15 = vmul.f32 %v342_v3, %v880_v9  ;;  %v352_v16 = vmul.f32 %v344_v4, %v884_v11  ;;  %v354_v17 = vmul.f32 %v346_v7, %v888_v13 }
  0xbf   : > { %v356_v19 = vmul.f32 %v340_v2, %v298_v34  ;;  %v358_v20 = vmul.f32 %v342_v3, %v299_v36  ;;  %v360_v21 = vmul.f32 %v344_v4, %v300_v38  ;;  %v362_v22 = vmul.f32 %v346_v7, %v301_v40  ;;  %v338_v23 = vpop.permute.xlu0 %337  ;;  %v372_v39 = vpop.permute.xlu1 %371 }
  0xc0   : > { %v341_v24 = vmul.f32 %v590_v61, %v338_v23  ;;  %v343_v25 = vmul.f32 %v592_v62, %v338_v23  ;;  %v345_v26 = vmul.f32 %v594_v63, %v338_v23  ;;  %v347_v27 = vmul.f32 %v596_v0, %v338_v23 }
  0xc1   : > { %v374_v28 = vsub.f32 %v367_v18, %v356_v19  ;;  %v376_v5 = vsub.f32 %v367_v18, %v358_v20  ;;  %v378_v29 = vsub.f32 %v367_v18, %v360_v21  ;;  %v380_v9 = vsub.f32 %v367_v18, %v362_v22 }
  0xc2   : > { %v357_v32 = vmul.f32 %v341_v24, %v298_v34  ;;  %v359_v33 = vmul.f32 %v343_v25, %v299_v36  ;;  %v361_v35 = vmul.f32 %v345_v26, %v300_v38  ;;  %v363_v37 = vmul.f32 %v347_v27, %v301_v40 }
  0xc3   : > { %v382_v30 = vadd.f32 %v374_v28, %v348_v8  ;;  %v384_v11 = vadd.f32 %v376_v5, %v350_v15  ;;  %v386_v31 = vadd.f32 %v378_v29, %v352_v16  ;;  %v388_v13 = vadd.f32 %v380_v9, %v354_v17 }
  0xc4   : > { %v349_v41 = vmul.f32 %v341_v24, %v874_v6  ;;  %v351_v34 = vmul.f32 %v343_v25, %v882_v10  ;;  %v353_v36 = vmul.f32 %v345_v26, %v886_v12  ;;  %v355_v38 = vmul.f32 %v347_v27, %v890_v14 }
  0xc5   : > { %390 = vst.msk [vmem:[%s206_s30] sm:$0xff] %vm217_vm0, %v382_v30  ;;  %392 = vst.msk [vmem:[%s206_s30 + $0x10] sm:$0xff] %vm217_vm0, %v384_v11  ;;  %v375_v40 = vsub.f32 %v372_v39, %v357_v32  ;;  %v377_v42 = vsub.f32 %v372_v39, %v359_v33  ;;  %v379_v43 = vsub.f32 %v372_v39, %v361_v35 }
  0xc6   : > { %394 = vst.msk [vmem:[%s206_s30 + $0x20] sm:$0xff] %vm217_vm0, %v386_v31  ;;  %396 = vst.msk [vmem:[%s206_s30 + $0x30] sm:$0xff] %vm217_vm0, %v388_v13  ;;  %v381_v44 = vsub.f32 %v372_v39, %v363_v37 }
  0xc7   : > { %v383_v6 = vadd.f32 %v375_v40, %v349_v41  ;;  %v385_v10 = vadd.f32 %v377_v42, %v351_v34  ;;  %v387_v12 = vadd.f32 %v379_v43, %v353_v36 }
  0xc8   : > { %v389_v45 = vadd.f32 %v381_v44, %v355_v38 }
  0xc9   : > { %391 = vst.msk [vmem:[%s206_s30 + $0x8] sm:$0xff] %vm217_vm0, %v383_v6  ;;  %393 = vst.msk [vmem:[%s206_s30 + $0x18] sm:$0xff] %vm217_vm0, %v385_v10 }
  0xca   : > { %395 = vst.msk [vmem:[%s206_s30 + $0x28] sm:$0xff] %vm217_vm0, %v387_v12  ;;  %397 = vst.msk [vmem:[%s206_s30 + $0x38] sm:$0xff] %vm217_vm0, %v389_v45 }
  0xcb   : > { %640 = shalt.err (!%p637_p5)
}
  0xcc   : > { %s641_s9 = scalar_lea.hbm %s946_s7, 1024  ;;  %s645_s23 = scalar_lea.hbm %s1004_s3, 2048 }
  0xcd   : > { %p642_p4 = scmp.ne.s32.totalorder %s946_s7, %s641_s9  ;;  %p646_p12 = scmp.lt.u32.totalorder %s946_s7, %s1004_s3 }
  0xce   : > { %p647_p1 = scmp.lt.u32.totalorder %s645_s23, %s641_s9  ;;  %p649_p8 = scmp.lt.u32.totalorder %s641_s9, %s946_s7 }
  0xcf   : > { %p643_p7 = pnand %p642_p4, %p1012_p9 }
  0xd0   : > { %p648_p3 = por %p647_p1, %p646_p12 }
  0xd1   : > { %p644_p10 = pneg %p643_p7 }
  0xd2   : > { %p650_p11 = por %p649_p8, %p648_p3 }
  0xd4   : > { %p651_p0 = pnand %p650_p11, %p644_p10 }
  0xd6   : > { %654 = shalt.err (!%p651_p0)
}
  0xd7   : > { %s716_s29 = smov 128   ;;  %s717_s30 = smov 8  }
  0xd8   : > { %522 = dma.vmem_to_hbm [thread:$0]  (%p1012_p9), %s948_s4, 1024, %s946_s7, %s399_s18, %s716_s29, %s716_s29, %s717_s30  }
  0xd9 PF: > { %s429_s15 = sand.u32 1, %s689_s12   ;;  %p1013_p6 = scmp.ne.s32.totalorder %s1009_s27, 0 }
  0xda   : > { %p1014_p13 = scmp.ge.s32.totalorder %s709_s17, 2  ;;  %s430_s5 = scalar_lea.sflag [#allocation4], %s429_s15 }
  0xdc   : > { %p529_p2 = pnand %p1014_p13, %p1013_p6 }
  0xde   : > { %684 = dma.done.wait (!%p529_p2), %s430_s5, 1024  }
  0xdf   : > { %686 = vsyncadd (!%p529_p2), %s430_s5, 4294966272  ;;  %s19_s17 = sadd.s32 1, %s709_s17   ;;  %s1015_s12 = smov %s693_s13 }
  0xe0   : > { %p16_p5 = scmp.ge.s32.totalorder %s19_s17, 4   ;;  %s1016_s13 = smov %s697_s14 }
  0xe1   : > { %s1017_s14 = smov %s794_s26  ;;  %s1018_s15 = smov %s705_s16 }
  0xe2   : > { %s1019_s16 = smov %s1021_s20  ;;  %18 = sbr.rel (!%p16_p5) target bundleno = 6 (0x6), region = 77 }
  0xe9   :  { %435 = vsyncpa [#allocation3], 1 }
  0xea   :  { %437 = vsyncpa [#allocation3 + $0x1], 1 }
  0xeb   :  { %438 = vsyncpa [#allocation4], 1 }
  0xec   :  { %440 = vsyncpa [#allocation4 + $0x1], 1 }

</bundles_post_ra>
